<compile_context>
chip_gen: v5e
topology: v5e:2x2
jax: 0.10.0
libtpu: 0.0.40
codegen_flags: <defaults>
</compile_context>

<pallas_src>
import functools

import jax
import jax.numpy as jnp
from jax.experimental import pallas as pl
from jax.experimental.pallas import tpu as pltpu


def _round_up(x, m):
    return ((x + m - 1) // m) * m


def _cdiv(a, b):
    return (a + b - 1) // b


def _device_kind():
    try:
        return jax.devices()[0].device_kind.lower()
    except Exception:
        return ""


def _soft_dice_partials_kernel(pred_ref, labels_ref, out_ref, *, n_classes,
                               tiles_per_split, tile_rows, lane,
                               n_valid_pixels, need_mask, use_bf16_exp):
    # pred_ref:   (C, TR, L) float — logits tile (N dim squeezed), native dtype.
    # labels_ref: (TR, L)    int32 — label tile (padded pixels carry n_classes).
    # out_ref:    (R, L)     f32   — per-(split, n) partial sums, resident across
    #                                the tile axis, R = round_up(3*C, 8):
    #                                 rows [0:C)   = sum(prob_c * 1{label==c})
    #                                 rows [C:2C)  = sum(prob_c)   (valid pixels)
    #                                 rows [2C:3C) = sum(1{label==c})
    s = pl.program_id(0)          # parallel split of the pixel range
    t = pl.program_id(2)          # tile (accumulation) axis

    @pl.when(t == 0)
    def _init():
        out_ref[...] = jnp.zeros_like(out_ref)

    C = n_classes
    x = pred_ref[...].astype(jnp.float32)        # (C, TR, L) softmax-chain carrier
    labels = labels_ref[...]                     # (TR, L)

    # Pixel-validity mask — only materialized when spatial padding exists.
    if need_mask:
        base_row = (s * tiles_per_split + t) * tile_rows
        row_iota = jax.lax.broadcasted_iota(jnp.int32, (tile_rows, lane), 0)
        lane_iota = jax.lax.broadcasted_iota(jnp.int32, (tile_rows, lane), 1)
        pix = (base_row + row_iota) * lane + lane_iota
        valid = (pix < n_valid_pixels).astype(jnp.float32)
    else:
        valid = None

    # Label masks / counts are independent of the softmax chain — hoisted out
    # of the class loop.  Padded labels (== n_classes) match no class.
    masks = [(labels == c).astype(jnp.float32) for c in range(C)]
    msum_rows = [jnp.sum(m, axis=0, keepdims=True) for m in masks]       # (1, L)

    inter_rows = []
    psum_rows = []
    for c in range(C):                           # static unroll, C is small
        # Reference re-applies softmax over the class axis every iteration.
        if c == 0:
            # Stabilize only the first pass; afterwards x is in [0, 1].
            x = x - jnp.max(x, axis=0, keepdims=True)    # class axis = major dim (VALU)
            ex = jnp.exp(x)
        elif use_bf16_exp:
            # EUP-bound: bf16 exp (~2x transcendental rate on v6e/v7x).
            # Denominator sum / normalization / accumulators stay f32.
            ex = jnp.exp(x.astype(jnp.bfloat16)).astype(jnp.float32)
        else:
            ex = jnp.exp(x)
        denom = jnp.sum(ex, axis=0, keepdims=True)                       # f32
        x = ex * pl.reciprocal(denom, approx=False)

        probs = x[c]                                                     # (TR, L)
        probs_v = probs if valid is None else probs * valid
        inter_rows.append(jnp.sum(probs * masks[c], axis=0, keepdims=True))
        psum_rows.append(jnp.sum(probs_v, axis=0, keepdims=True))

    # Single unmasked full-block accumulate (replaces 3C sublane-masked RMWs).
    rows_pad = out_ref.shape[0] - 3 * C
    pieces = inter_rows + psum_rows + msum_rows
    if rows_pad:
        pieces = pieces + [jnp.zeros((rows_pad, lane), jnp.float32)]
    stacked = jnp.concatenate(pieces, axis=0)                            # (R, L)
    out_ref[...] = out_ref[...] + stacked


def _choose_tile_rows(n_classes, lane, pred_itemsize, budget_bytes):
    # Per-row VMEM footprint: double-buffered pred + labels input tiles plus
    # ~4x f32-pred-tile worth of in-kernel temporaries (x, ex, products, masks).
    bytes_per_row = (2 * n_classes * lane * pred_itemsize   # pred, double-buffered
                     + 4 * n_classes * lane * 4             # f32 temporaries
                     + 2 * lane * 4)                        # labels, double-buffered
    tr = (budget_bytes // bytes_per_row) // 8 * 8
    return max(8, int(tr))


def soft_dice_loss(pred, labels, weights, eps, *, n_classes=5,
                   use_bf16_exp=None, n_split=None, lane=None, tile_rows=None,
                   budget_bytes=None, vmem_limit_bytes=None):
    """pred: (N, C, H, W) float logits (f32 or bf16); labels: (N, H, W) ints."""
    N, C, H, W = pred.shape
    assert C == n_classes
    M = H * W

    dk = _device_kind()
    if use_bf16_exp is None:
        # bf16 EUP exists on v6e / v7x; on v5e (and unknown chips) stay f32.
        use_bf16_exp = ("v6" in dk) or ("v7" in dk)
    if budget_bytes is None:
        budget_bytes = (16 << 20) if "v7" in dk else (24 << 20)
    if vmem_limit_bytes is None:
        vmem_limit_bytes = (32 << 20) if "v7" in dk else (64 << 20)

    # Lane-dense spatial layout: (H, W) -> (rows, lane), lane % 128 == 0.
    if lane is None:
        lane = next((l for l in (512, 256, 128) if M % l == 0), 128)
    assert lane % 128 == 0
    rows_needed = _cdiv(M, lane)

    if n_split is None:
        # v7x has 2 TensorCores; when N alone can't feed both, split the
        # accumulation range into per-core partial outputs.
        n_split = 2 if ("v7" in dk and N == 1 and rows_needed >= 16) else 1

    if tile_rows is None:
        tr_budget = _choose_tile_rows(C, lane, pred.dtype.itemsize, budget_bytes)
        per_split_rows = _cdiv(rows_needed, n_split)
        if per_split_rows <= tr_budget:
            tile_rows = per_split_rows if n_split == 1 else _round_up(per_split_rows, 8)
            tiles_per_split = 1
        else:
            tile_rows = tr_budget
            tiles_per_split = _cdiv(per_split_rows, tile_rows)
    else:
        tiles_per_split = _cdiv(_cdiv(rows_needed, n_split), tile_rows)
        assert tile_rows % 8 == 0 or (n_split == 1 and tiles_per_split == 1)

    rows_total = n_split * tiles_per_split * tile_rows
    m_pad = rows_total * lane
    need_mask = m_pad > M

    # Free reshapes (NCHW is contiguous); padding only for awkward H*W.
    pred_flat = pred.reshape(N, C, M)
    if labels.dtype != jnp.int32:
        # TODO(synk): accept int8 labels directly to cut the label DMA stream 4x.
        labels = labels.astype(jnp.int32)
    labels_flat = labels.reshape(N, M)
    if need_mask:
        pad = m_pad - M
        pred_flat = jnp.pad(pred_flat, ((0, 0), (0, 0), (0, pad)))
        # Padded label value n_classes matches no class -> zero inter/msum;
        # padded psum contributions are removed by the in-kernel validity mask.
        labels_flat = jnp.pad(labels_flat, ((0, 0), (0, pad)),
                              constant_values=n_classes)
    pred_t = pred_flat.reshape(N, C, rows_total, lane)
    labels_t = labels_flat.reshape(N, rows_total, lane)

    R = _round_up(3 * C, 8)                      # pad accumulator rows to sublanes
    nts = tiles_per_split

    kernel = functools.partial(
        _soft_dice_partials_kernel, n_classes=n_classes,
        tiles_per_split=tiles_per_split, tile_rows=tile_rows, lane=lane,
        n_valid_pixels=M, need_mask=need_mask, use_bf16_exp=use_bf16_exp)

    partials = pl.pallas_call(
        kernel,
        out_shape=jax.ShapeDtypeStruct((n_split, N, R, lane), jnp.float32),
        grid=(n_split, N, tiles_per_split),
        in_specs=[
            # pred: full class axis (major slab dim), tiled rows, lane-dense.
            pl.BlockSpec((None, C, tile_rows, lane),
                         lambda s, n, t: (n, 0, s * nts + t, 0)),
            pl.BlockSpec((None, tile_rows, lane),
                         lambda s, n, t: (n, s * nts + t, 0)),
        ],
        # Output block depends only on (s, n) -> resident accumulator across t.
        out_specs=pl.BlockSpec((None, None, R, lane),
                               lambda s, n, t: (s, n, 0, 0)),
        compiler_params=pltpu.CompilerParams(
            dimension_semantics=("parallel", "parallel", "arbitrary"),
            vmem_limit_bytes=vmem_limit_bytes,
        ),
    )(pred_t, labels_t)

    # Tiny final combine (3*C scalars) in plain JAX.
    sums = jnp.sum(partials[:, :, :3 * C, :], axis=(0, 1, 3))    # (3C,)
    inter = sums[:C]
    psum = sums[C:2 * C]
    msum = sums[2 * C:3 * C]
    w = jnp.asarray(weights, jnp.float32)
    eps_f = jnp.asarray(eps, jnp.float32)
    loss = jnp.sum(-w * (inter / (psum + msum + eps_f)))
    # self.reduce -> loss.mean() on a scalar is a no-op.
    return loss


def _reference_soft_dice(pred, labels, weights, eps, n_classes=5):
    """Pure-JAX reference mirroring the PyTorch forward (for sanity check)."""
    pred = pred.astype(jnp.float32)
    loss = jnp.float32(0.0)
    for c in range(n_classes):
        pred = jax.nn.softmax(pred, axis=1)          # re-softmax each iteration
        pred_probs = pred[:, c]
        labels_idx = (labels == c).astype(jnp.float32)
        inter = jnp.sum(pred_probs * labels_idx)
        delim = jnp.sum(pred_probs) + jnp.sum(labels_idx)
        loss = loss + (-weights[c]) * (inter / (delim + eps))
    return loss


if __name__ == "__main__":
    n_classes = 5
    weights = jnp.ones((n_classes,), dtype=jnp.float32)   # nn.Module defaults
    eps = 1e-5

    key = jax.random.PRNGKey(0)
    k1p, k1l, k2p, k2l = jax.random.split(key, 4)

    # Case 1: typical small NCHW batch (H*W divides 128 -> no padding path).
    N1, H1, W1 = 2, 16, 16
    pred1 = jax.random.normal(k1p, (N1, n_classes, H1, W1), dtype=jnp.float32)
    labels1 = jax.random.randint(k1l, (N1, H1, W1), 0, n_classes, dtype=jnp.int32)
    ref1 = _reference_soft_dice(pred1, labels1, weights, eps, n_classes)

    # 1a: strict-f32 math must match the reference tightly.
    loss1 = soft_dice_loss(pred1, labels1, weights, eps, n_classes=n_classes,
                           use_bf16_exp=False)
    loss1 = jax.block_until_ready(loss1)
    assert jnp.allclose(loss1, ref1, atol=2e-5, rtol=2e-5), (loss1, ref1)

    # 1b: device-tuned path (bf16 exp on v6e/v7x) — looser tolerance.
    loss1b = soft_dice_loss(pred1, labels1, weights, eps, n_classes=n_classes)
    loss1b = jax.block_until_ready(loss1b)
    assert jnp.allclose(loss1b, ref1, atol=5e-3, rtol=5e-3), (loss1b, ref1)

    # Case 2: awkward H*W (1440 pixels) -> padding + validity mask, plus forced
    # small tiles to exercise the multi-tile resident accumulator.
    N2, H2, W2 = 1, 40, 36
    pred2 = jax.random.normal(k2p, (N2, n_classes, H2, W2), dtype=jnp.float32)
    labels2 = jax.random.randint(k2l, (N2, H2, W2), 0, n_classes, dtype=jnp.int32)
    ref2 = _reference_soft_dice(pred2, labels2, weights, eps, n_classes)

    loss2 = soft_dice_loss(pred2, labels2, weights, eps, n_classes=n_classes,
                           use_bf16_exp=False, lane=128, tile_rows=8)
    loss2 = jax.block_until_ready(loss2)
    assert jnp.allclose(loss2, ref2, atol=2e-5, rtol=2e-5), (loss2, ref2)

    print("KERNEL_OK")
</pallas_src>

<mosaic_0001>
module attributes {stable_mosaic.version = 11 : i64} {
  func.func @_soft_dice_partials_kernel(%arg0: i32, %arg1: i32, %arg2: i32, %arg3: memref<1x5x1x256xf32, #tpu.memory_space<vmem>>, %arg4: memref<1x1x256xi32, #tpu.memory_space<vmem>>, %arg5: memref<1x1x16x256xf32, #tpu.memory_space<vmem>>) attributes {dimension_semantics = [#tpu.dimension_semantics<parallel>, #tpu.dimension_semantics<parallel>, #tpu.dimension_semantics<arbitrary>], iteration_bounds = array<i64: 1, 2, 1>, scalar_prefetch = 0 : i64, scratch_operands = 0 : i64, tpu.core_type = #tpu.core_type<tc>, window_params = [{transform_indices = @transform_0, window_bounds = array<i64: 1, 5, 1, 256>}, {transform_indices = @transform_1, window_bounds = array<i64: 1, 1, 256>}, {transform_indices = @transform_2, window_bounds = array<i64: 1, 1, 16, 256>}]} {
    %c0_i32 = arith.constant 0 : i32
    %0 = arith.cmpi eq, %arg2, %c0_i32 : i32
    %1 = arith.extui %0 : i1 to i32
    %c0_i32_0 = arith.constant 0 : i32
    %2 = arith.cmpi ne, %1, %c0_i32_0 : i32
    scf.if %2 {
      %cst_37 = arith.constant 0.000000e+00 : f32
      %114 = vector.broadcast %cst_37 : f32 to vector<16x256xf32>
      %c0_38 = arith.constant 0 : index
      %c0_39 = arith.constant 0 : index
      %c0_40 = arith.constant 0 : index
      %c0_41 = arith.constant 0 : index
      %115 = vector.load %arg5[%c0_38, %c0_39, %c0_40, %c0_41] : memref<1x1x16x256xf32, #tpu.memory_space<vmem>>, vector<1x1x16x256xf32>
      %116 = vector.shape_cast %115 : vector<1x1x16x256xf32> to vector<16x256xf32>
      %117 = vector.shape_cast %114 : vector<16x256xf32> to vector<1x1x16x256xf32>
      tpu.vector_store %arg5[%c0_38, %c0_39, %c0_40, %c0_41], %117 {strides = array<i32>} : memref<1x1x16x256xf32, #tpu.memory_space<vmem>>, vector<1x1x16x256xf32>,
    } else {
    }
    %c0 = arith.constant 0 : index
    %c0_1 = arith.constant 0 : index
    %c0_2 = arith.constant 0 : index
    %c0_3 = arith.constant 0 : index
    %3 = vector.load %arg3[%c0, %c0_1, %c0_2, %c0_3] : memref<1x5x1x256xf32, #tpu.memory_space<vmem>>, vector<1x5x1x256xf32>
    %4 = vector.shape_cast %3 : vector<1x5x1x256xf32> to vector<5x1x256xf32>
    %c0_4 = arith.constant 0 : index
    %c0_5 = arith.constant 0 : index
    %c0_6 = arith.constant 0 : index
    %5 = vector.load %arg4[%c0_4, %c0_5, %c0_6] : memref<1x1x256xi32, #tpu.memory_space<vmem>>, vector<1x1x256xi32>
    %6 = vector.shape_cast %5 : vector<1x1x256xi32> to vector<1x256xi32>
    %c0_i32_7 = arith.constant 0 : i32
    %7 = vector.broadcast %c0_i32_7 : i32 to vector<1x256xi32>
    %8 = arith.cmpi eq, %6, %7 : vector<1x256xi32>
    %9 = arith.extui %8 : vector<1x256xi1> to vector<1x256xi32>
    %10 = arith.sitofp %9 : vector<1x256xi32> to vector<1x256xf32>
    %c1_i32 = arith.constant 1 : i32
    %11 = vector.broadcast %c1_i32 : i32 to vector<1x256xi32>
    %12 = arith.cmpi eq, %6, %11 : vector<1x256xi32>
    %13 = arith.extui %12 : vector<1x256xi1> to vector<1x256xi32>
    %14 = arith.sitofp %13 : vector<1x256xi32> to vector<1x256xf32>
    %c2_i32 = arith.constant 2 : i32
    %15 = vector.broadcast %c2_i32 : i32 to vector<1x256xi32>
    %16 = arith.cmpi eq, %6, %15 : vector<1x256xi32>
    %17 = arith.extui %16 : vector<1x256xi1> to vector<1x256xi32>
    %18 = arith.sitofp %17 : vector<1x256xi32> to vector<1x256xf32>
    %c3_i32 = arith.constant 3 : i32
    %19 = vector.broadcast %c3_i32 : i32 to vector<1x256xi32>
    %20 = arith.cmpi eq, %6, %19 : vector<1x256xi32>
    %21 = arith.extui %20 : vector<1x256xi1> to vector<1x256xi32>
    %22 = arith.sitofp %21 : vector<1x256xi32> to vector<1x256xf32>
    %c4_i32 = arith.constant 4 : i32
    %23 = vector.broadcast %c4_i32 : i32 to vector<1x256xi32>
    %24 = arith.cmpi eq, %6, %23 : vector<1x256xi32>
    %25 = arith.extui %24 : vector<1x256xi1> to vector<1x256xi32>
    %26 = arith.sitofp %25 : vector<1x256xi32> to vector<1x256xf32>
    %cst = arith.constant dense<0.000000e+00> : vector<256xf32>
    %27 = vector.multi_reduction <add>, %10, %cst [0] : vector<1x256xf32> to vector<256xf32>
    %28 = vector.shape_cast %27 : vector<256xf32> to vector<1x256xf32>
    %cst_8 = arith.constant dense<0.000000e+00> : vector<256xf32>
    %29 = vector.multi_reduction <add>, %14, %cst_8 [0] : vector<1x256xf32> to vector<256xf32>
    %30 = vector.shape_cast %29 : vector<256xf32> to vector<1x256xf32>
    %cst_9 = arith.constant dense<0.000000e+00> : vector<256xf32>
    %31 = vector.multi_reduction <add>, %18, %cst_9 [0] : vector<1x256xf32> to vector<256xf32>
    %32 = vector.shape_cast %31 : vector<256xf32> to vector<1x256xf32>
    %cst_10 = arith.constant dense<0.000000e+00> : vector<256xf32>
    %33 = vector.multi_reduction <add>, %22, %cst_10 [0] : vector<1x256xf32> to vector<256xf32>
    %34 = vector.shape_cast %33 : vector<256xf32> to vector<1x256xf32>
    %cst_11 = arith.constant dense<0.000000e+00> : vector<256xf32>
    %35 = vector.multi_reduction <add>, %26, %cst_11 [0] : vector<1x256xf32> to vector<256xf32>
    %36 = vector.shape_cast %35 : vector<256xf32> to vector<1x256xf32>
    %cst_12 = arith.constant dense<0xFF800000> : vector<1x256xf32>
    %37 = vector.multi_reduction <maximumf>, %4, %cst_12 [0] : vector<5x1x256xf32> to vector<1x256xf32>
    %38 = vector.shape_cast %37 : vector<1x256xf32> to vector<1x1x256xf32>
    %39 = vector.broadcast %38 : vector<1x1x256xf32> to vector<5x1x256xf32>
    %40 = arith.subf %4, %39 : vector<5x1x256xf32>
    %41 = math.exp %40 : vector<5x1x256xf32>
    %cst_13 = arith.constant dense<0.000000e+00> : vector<1x256xf32>
    %42 = vector.multi_reduction <add>, %41, %cst_13 [0] : vector<5x1x256xf32> to vector<1x256xf32>
    %43 = vector.shape_cast %42 : vector<1x256xf32> to vector<1x1x256xf32>
    %44 = tpu.reciprocal %43 : vector<1x1x256xf32> -> vector<1x1x256xf32>
    %45 = vector.broadcast %44 : vector<1x1x256xf32> to vector<5x1x256xf32>
    %46 = arith.mulf %41, %45 : vector<5x1x256xf32>
    %47 = vector.extract_strided_slice %46 {offsets = [0, 0, 0], sizes = [1, 1, 256], strides = [1, 1, 1]} : vector<5x1x256xf32> to vector<1x1x256xf32>
    %48 = vector.shape_cast %47 : vector<1x1x256xf32> to vector<1x256xf32>
    %49 = arith.mulf %48, %10 : vector<1x256xf32>
    %cst_14 = arith.constant dense<0.000000e+00> : vector<256xf32>
    %50 = vector.multi_reduction <add>, %49, %cst_14 [0] : vector<1x256xf32> to vector<256xf32>
    %51 = vector.shape_cast %50 : vector<256xf32> to vector<1x256xf32>
    %cst_15 = arith.constant dense<0.000000e+00> : vector<256xf32>
    %52 = vector.multi_reduction <add>, %48, %cst_15 [0] : vector<1x256xf32> to vector<256xf32>
    %53 = vector.shape_cast %52 : vector<256xf32> to vector<1x256xf32>
    %54 = math.exp %46 : vector<5x1x256xf32>
    %cst_16 = arith.constant dense<0.000000e+00> : vector<1x256xf32>
    %55 = vector.multi_reduction <add>, %54, %cst_16 [0] : vector<5x1x256xf32> to vector<1x256xf32>
    %56 = vector.shape_cast %55 : vector<1x256xf32> to vector<1x1x256xf32>
    %57 = tpu.reciprocal %56 : vector<1x1x256xf32> -> vector<1x1x256xf32>
    %58 = vector.broadcast %57 : vector<1x1x256xf32> to vector<5x1x256xf32>
    %59 = arith.mulf %54, %58 : vector<5x1x256xf32>
    %60 = vector.extract_strided_slice %59 {offsets = [1, 0, 0], sizes = [1, 1, 256], strides = [1, 1, 1]} : vector<5x1x256xf32> to vector<1x1x256xf32>
    %61 = vector.shape_cast %60 : vector<1x1x256xf32> to vector<1x256xf32>
    %62 = arith.mulf %61, %14 : vector<1x256xf32>
    %cst_17 = arith.constant dense<0.000000e+00> : vector<256xf32>
    %63 = vector.multi_reduction <add>, %62, %cst_17 [0] : vector<1x256xf32> to vector<256xf32>
    %64 = vector.shape_cast %63 : vector<256xf32> to vector<1x256xf32>
    %cst_18 = arith.constant dense<0.000000e+00> : vector<256xf32>
    %65 = vector.multi_reduction <add>, %61, %cst_18 [0] : vector<1x256xf32> to vector<256xf32>
    %66 = vector.shape_cast %65 : vector<256xf32> to vector<1x256xf32>
    %67 = math.exp %59 : vector<5x1x256xf32>
    %cst_19 = arith.constant dense<0.000000e+00> : vector<1x256xf32>
    %68 = vector.multi_reduction <add>, %67, %cst_19 [0] : vector<5x1x256xf32> to vector<1x256xf32>
    %69 = vector.shape_cast %68 : vector<1x256xf32> to vector<1x1x256xf32>
    %70 = tpu.reciprocal %69 : vector<1x1x256xf32> -> vector<1x1x256xf32>
    %71 = vector.broadcast %70 : vector<1x1x256xf32> to vector<5x1x256xf32>
    %72 = arith.mulf %67, %71 : vector<5x1x256xf32>
    %73 = vector.extract_strided_slice %72 {offsets = [2, 0, 0], sizes = [1, 1, 256], strides = [1, 1, 1]} : vector<5x1x256xf32> to vector<1x1x256xf32>
    %74 = vector.shape_cast %73 : vector<1x1x256xf32> to vector<1x256xf32>
    %75 = arith.mulf %74, %18 : vector<1x256xf32>
    %cst_20 = arith.constant dense<0.000000e+00> : vector<256xf32>
    %76 = vector.multi_reduction <add>, %75, %cst_20 [0] : vector<1x256xf32> to vector<256xf32>
    %77 = vector.shape_cast %76 : vector<256xf32> to vector<1x256xf32>
    %cst_21 = arith.constant dense<0.000000e+00> : vector<256xf32>
    %78 = vector.multi_reduction <add>, %74, %cst_21 [0] : vector<1x256xf32> to vector<256xf32>
    %79 = vector.shape_cast %78 : vector<256xf32> to vector<1x256xf32>
    %80 = math.exp %72 : vector<5x1x256xf32>
    %cst_22 = arith.constant dense<0.000000e+00> : vector<1x256xf32>
    %81 = vector.multi_reduction <add>, %80, %cst_22 [0] : vector<5x1x256xf32> to vector<1x256xf32>
    %82 = vector.shape_cast %81 : vector<1x256xf32> to vector<1x1x256xf32>
    %83 = tpu.reciprocal %82 : vector<1x1x256xf32> -> vector<1x1x256xf32>
    %84 = vector.broadcast %83 : vector<1x1x256xf32> to vector<5x1x256xf32>
    %85 = arith.mulf %80, %84 : vector<5x1x256xf32>
    %86 = vector.extract_strided_slice %85 {offsets = [3, 0, 0], sizes = [1, 1, 256], strides = [1, 1, 1]} : vector<5x1x256xf32> to vector<1x1x256xf32>
    %87 = vector.shape_cast %86 : vector<1x1x256xf32> to vector<1x256xf32>
    %88 = arith.mulf %87, %22 : vector<1x256xf32>
    %cst_23 = arith.constant dense<0.000000e+00> : vector<256xf32>
    %89 = vector.multi_reduction <add>, %88, %cst_23 [0] : vector<1x256xf32> to vector<256xf32>
    %90 = vector.shape_cast %89 : vector<256xf32> to vector<1x256xf32>
    %cst_24 = arith.constant dense<0.000000e+00> : vector<256xf32>
    %91 = vector.multi_reduction <add>, %87, %cst_24 [0] : vector<1x256xf32> to vector<256xf32>
    %92 = vector.shape_cast %91 : vector<256xf32> to vector<1x256xf32>
    %93 = math.exp %85 : vector<5x1x256xf32>
    %cst_25 = arith.constant dense<0.000000e+00> : vector<1x256xf32>
    %94 = vector.multi_reduction <add>, %93, %cst_25 [0] : vector<5x1x256xf32> to vector<1x256xf32>
    %95 = vector.shape_cast %94 : vector<1x256xf32> to vector<1x1x256xf32>
    %96 = tpu.reciprocal %95 : vector<1x1x256xf32> -> vector<1x1x256xf32>
    %97 = vector.broadcast %96 : vector<1x1x256xf32> to vector<5x1x256xf32>
    %98 = arith.mulf %93, %97 : vector<5x1x256xf32>
    %99 = vector.extract_strided_slice %98 {offsets = [4, 0, 0], sizes = [1, 1, 256], strides = [1, 1, 1]} : vector<5x1x256xf32> to vector<1x1x256xf32>
    %100 = vector.shape_cast %99 : vector<1x1x256xf32> to vector<1x256xf32>
    %101 = arith.mulf %100, %26 : vector<1x256xf32>
    %cst_26 = arith.constant dense<0.000000e+00> : vector<256xf32>
    %102 = vector.multi_reduction <add>, %101, %cst_26 [0] : vector<1x256xf32> to vector<256xf32>
    %103 = vector.shape_cast %102 : vector<256xf32> to vector<1x256xf32>
    %cst_27 = arith.constant dense<0.000000e+00> : vector<256xf32>
    %104 = vector.multi_reduction <add>, %100, %cst_27 [0] : vector<1x256xf32> to vector<256xf32>
    %105 = vector.shape_cast %104 : vector<256xf32> to vector<1x256xf32>
    %cst_28 = arith.constant 0.000000e+00 : f32
    %106 = vector.broadcast %cst_28 : f32 to vector<1x256xf32>
    %107 = tpu.concatenate %51, %64, %77, %90, %103, %53, %66, %79, %92, %105, %28, %30, %32, %34, %36, %106 in 0 : vector<1x256xf32>, vector<1x256xf32>, vector<1x256xf32>, vector<1x256xf32>, vector<1x256xf32>, vector<1x256xf32>, vector<1x256xf32>, vector<1x256xf32>, vector<1x256xf32>, vector<1x256xf32>, vector<1x256xf32>, vector<1x256xf32>, vector<1x256xf32>, vector<1x256xf32>, vector<1x256xf32>, vector<1x256xf32> -> vector<16x256xf32>
    %c0_29 = arith.constant 0 : index
    %c0_30 = arith.constant 0 : index
    %c0_31 = arith.constant 0 : index
    %c0_32 = arith.constant 0 : index
    %108 = vector.load %arg5[%c0_29, %c0_30, %c0_31, %c0_32] : memref<1x1x16x256xf32, #tpu.memory_space<vmem>>, vector<1x1x16x256xf32>
    %109 = vector.shape_cast %108 : vector<1x1x16x256xf32> to vector<16x256xf32>
    %110 = arith.addf %109, %107 : vector<16x256xf32>
    %c0_33 = arith.constant 0 : index
    %c0_34 = arith.constant 0 : index
    %c0_35 = arith.constant 0 : index
    %c0_36 = arith.constant 0 : index
    %111 = vector.load %arg5[%c0_33, %c0_34, %c0_35, %c0_36] : memref<1x1x16x256xf32, #tpu.memory_space<vmem>>, vector<1x1x16x256xf32>
    %112 = vector.shape_cast %111 : vector<1x1x16x256xf32> to vector<16x256xf32>
    %113 = vector.shape_cast %110 : vector<16x256xf32> to vector<1x1x16x256xf32>
    tpu.vector_store %arg5[%c0_33, %c0_34, %c0_35, %c0_36], %113 {strides = array<i32>} : memref<1x1x16x256xf32, #tpu.memory_space<vmem>>, vector<1x1x16x256xf32>,
    return
  }
  func.func @transform_0(%arg0: i32, %arg1: i32, %arg2: i32) -> (i32, i32, i32, i32) {
    %c1_i32 = arith.constant 1 : i32
    %0 = arith.muli %arg0, %c1_i32 : i32
    %1 = arith.addi %0, %arg2 : i32
    %c0_i32 = arith.constant 0 : i32
    %c0_i32_0 = arith.constant 0 : i32
    %c0_i32_1 = arith.constant 0 : i32
    return %arg1, %c0_i32, %1, %c0_i32_0 : i32, i32, i32, i32
  }
  func.func @transform_1(%arg0: i32, %arg1: i32, %arg2: i32) -> (i32, i32, i32) {
    %c1_i32 = arith.constant 1 : i32
    %0 = arith.muli %arg0, %c1_i32 : i32
    %1 = arith.addi %0, %arg2 : i32
    %c0_i32 = arith.constant 0 : i32
    %c0_i32_0 = arith.constant 0 : i32
    return %arg1, %1, %c0_i32 : i32, i32, i32
  }
  func.func @transform_2(%arg0: i32, %arg1: i32, %arg2: i32) -> (i32, i32, i32, i32) {
    %c0_i32 = arith.constant 0 : i32
    %c0_i32_0 = arith.constant 0 : i32
    %c0_i32_1 = arith.constant 0 : i32
    return %arg0, %arg1, %c0_i32, %c0_i32_0 : i32, i32, i32, i32
  }
}

</mosaic_0001>

<bundles_post_ra>
// kernel: tpu_custom_call.1
= control target key start
LH: loop header
LB: loop body
LE: loop exit
PB: predicated region body
PF: predicated region fallthrough
CT: control target
= control target key end

     0   :  { %7 = vsyncpa [#allocation3], 0  ;;  %s1701_s0 = inlined_call_operand.hbm [shape: f32[2,5,1,256], index: 0, kind: input, shape index: {}]   ;;  %s1702_s1 = inlined_call_operand.hbm [shape: s32[2,1,256], index: 1, kind: input, shape index: {}]   ;;  %s1703_s2 = inlined_call_operand.hbm [shape: f32[1,2,16,256], index: 2, kind: output, shape index: {}]  }
   0x1   :  { %9 = vsyncpa [#allocation3 + $0x1], 0 }
   0x2   :  { %10 = vsyncpa [#allocation6], 0 }
   0x3   :  { %12 = vsyncpa [#allocation6 + $0x1], 0 }
   0x4   :  { %13 = vsyncpa [#allocation4], 0 }
   0x5   :  { %15 = vsyncpa [#allocation4 + $0x1], 0  ;;  %s1346_s9 = smov 0   ;;  %s1348_s10 = smov 0  }
   0x6   :  { %s1350_s11 = smov 0   ;;  %s1352_s12 = smov 0  }
   0x7   :  { %s1354_s13 = smov 0   ;;  %s1356_s14 = smov 0  }
   0x8 LB: > { %s1013_s15 = sadd.s32 4294967295, %s1324_s14   ;;  %s1014_s16 = sadd.s32 4294967294, %s1324_s14   ;;  %s1324_s14 = sphi %s1356_s14, %s21_s14   ;;  %s1320_s13 = sphi %s1354_s13, %s1717_s13   ;;  %s1316_s12 = sphi %s1352_s12, %s1716_s12   ;;  %s1312_s11 = sphi %s1350_s11, %s1715_s11   ;;  %s1308_s10 = sphi %s1348_s10, %s1714_s10   ;;  %s1304_s9 = sphi %s1346_s9, %s1713_s9  }
   0x9   : > { %s36_s17 = sadd.s32 1, %s1320_s13  ;;  %s51_s18 = sadd.s32 1, %s1312_s11 }
   0xa   : > { %p38_p0 = scmp.ge.s32.totalorder %s36_s17, 2  ;;  %p58_p1 = scmp.ne.s32.totalorder %s1312_s11, %s1308_s10 }
   0xb   : > { %p59_p2 = scmp.eq.s32.totalorder %s1324_s14, 0  ;;  %p64_p3 = scmp.ne.s32.totalorder %s1308_s10, %s1304_s9 }
   0xc   : > { %s1719_s17 = smov (%p38_p0, %s36_s17), 0  ;;  %p65_p5 = scmp.eq.s32.totalorder %s1013_s15, 0 }
   0xd   : > { %p1387_p4 = por %p59_p2, %p58_p1  ;;  %s46_s20 = ssub.s32 %s1320_s13, %s1719_s17 }
   0xe   : > { %p120_p6 = scmp.eq.s32.totalorder %s1013_s15, 1  ;;  %p49_p7 = scmp.eq.s32.totalorder %s46_s20, 0 }
   0xf   : > { %p1393_p8 = por %p65_p5, %p64_p3  ;;  %p126_p10 = scmp.eq.s32.totalorder %s1014_s16, 1 }
  0x10   : > { %p1397_p9 = por %p120_p6, %p58_p1  ;;  %p1016_p12 = scmp.ge.s32.totalorder %s1324_s14, 2 }
  0x11   : > { %s1402_s23 = scalar_select %p49_p7, %s1312_s11, %s51_s18  }
  0x12   : > { %p1404_p11 = por %p126_p10, %p64_p3  ;;  %p1053_p13 = scmp.lt.s32.totalorder %s1324_s14, 2 }
  0x13   : > { %s146_s25 = sand.u32 1, %s1312_s11   ;;  %s1034_s27 = smul.u32 10, %s1320_s13 }
  0x14   : > { %s1033_s26 = smul.u32 10, %s146_s25  ;;  %p1414_p0 = pnand %p1053_p13, %p1387_p4 }
  0x15   : > { %s157_s3 = scalar_lea.hbm %s1701_s0, %s1034_s27  ;;  %p1019_p1 = scmp.ge.s32.totalorder %s1324_s14, 1 }
  0x16   : > { %s150_s4 = scalar_lea.vmem [#allocation2], %s1033_s26  ;;  %s158_s6 = sshll.u32 %s157_s3, 4  ;;  %s159_s6 = int_to_ptr.hbm [resolvable:$true] %s158_s6 }
  0x17   : > { %s160_s5 = sshll.u32 %s150_s4, 4  ;;  %s147_s7 = scalar_lea.sflag [#allocation3], %s146_s25  ;;  %s161_s5 = int_to_ptr.vmem [resolvable:$true] %s160_s5 }
  0x18   : > { %s1326_s8 = smov 32   ;;  %s1327_s15 = smov 2  }
  0x19   : > { %1045 = dma.hbm_to_vmem [thread:$0]  (!%p1414_p0), %s159_s6, 160, %s161_s5, %s147_s7, %s1326_s8, %s1326_s8, %s1327_s15  }
  0x1a   : > { %p190_p2 = scmp.lt.s32.totalorder %s1324_s14, 3  ;;  %s1017_s16 = sshll.u32 %s146_s25, 1 }
  0x1b   : > { %s1018_s18 = sshll.u32 %s1320_s13, 1  ;;  %s174_s26 = scalar_lea.vmem [#allocation5], %s1017_s16 }
  0x1c   : > { %p191_p3 = pnand %p1019_p1, %p190_p2  ;;  %s181_s27 = scalar_lea.hbm %s1702_s1, %s1018_s18 }
  0x1d   : > { %s185_s29 = sshll.u32 %s174_s26, 4  ;;  %s183_s30 = sshll.u32 %s181_s27, 4  ;;  %s186_s29 = int_to_ptr.vmem [resolvable:$true] %s185_s29  ;;  %s184_s30 = int_to_ptr.hbm [resolvable:$true] %s183_s30 }
  0x1e   : > { %s171_s3 = scalar_lea.sflag [#allocation6], %s146_s25  ;;  %194 = sbr.rel (%p191_p3) target bundleno = 288 (0x120), region = 28 }
  0x1f   : > { %1048 = dma.hbm_to_vmem [thread:$0]  (!%p1414_p0), %s184_s30, 32, %s186_s29, %s171_s3  }
  0x20   : > { %s1432_s4 = sand.u32 (!%p191_p3), 1, %s1308_s10  }
  0x21   : > { %s1035_s5 = smul.u32 (!%p191_p3), 10, %s1432_s4  ;;  %s197_s6 = scalar_lea.sflag (!%p191_p3), [#allocation3], %s1432_s4 }
  0x23   : > { %s200_s7 = scalar_lea.vmem [#allocation2], %s1035_s5 }
  0x24   : > { %1291 = dma.done.wait (%p1393_p8), %s197_s6, 160  }
  0x25   : > { %1293 = vsyncadd (%p1393_p8), %s197_s6, 4294967136  ;;  %s1020_s25 = sshll.u32 %s1432_s4, 1  ;;  %s207_s28 = scalar_lea.sflag [#allocation6], %s1432_s4 }
  0x26   : > { %s1442_s8 = scalar_lea.vmem [#allocation5], %s1020_s25 }
  0x27   : > { %1295 = dma.done.wait (%p1393_p8), %s207_s28, 32  }
  0x28   : > { %1297 = vsyncadd (%p1393_p8), %s207_s28, 4294967264  ;;  %v273_v0 = vlaneseq  ;;  %v247_v1 = vld [vmem:[%s200_s7] sm:$0x3]  ;;  %v249_v2 = vld [vmem:[%s200_s7 + $0x4] sm:$0x3]  ;;  %vm326_vm1 = vcmask 1040384  }
  0x29   : > { %v248_v3 = vld [vmem:[%s200_s7 + $0x2] sm:$0x3]  ;;  %v250_v4 = vld [vmem:[%s200_s7 + $0x6] sm:$0x3]  ;;  %v251_v5 = vld [vmem:[%s200_s7 + $0x8] sm:$0x3] }
  0x2a   : > { %vm275_vm0 = vcmp.lt.s32.totalorder %v273_v0, 256  ;;  %s1021_s21 = sshll.u32 %s1432_s4, 5  ;;  %s1032_s15 = sshll.u32 %s1316_s12, 5 }
  0x2b   : > { %v277_v6 = vsel %vm275_vm0, %v247_v1, -inf  ;;  %v279_v7 = vsel %vm275_vm0, %v249_v2, -inf  ;;  %v278_v8 = vsel %vm275_vm0, %v248_v3, -inf  ;;  %v280_v9 = vsel %vm275_vm0, %v250_v4, -inf  ;;  %s893_s18 = scalar_lea.hbm %s1703_s2, %s1032_s15  ;;  %s236_s19 = scalar_lea.vmem [#allocation7], %s1021_s21 }
  0x2c   : > { %v281_v10 = vsel %vm275_vm0, %v251_v5, -inf  ;;  %v284_v12 = vmax.f32 %v279_v7, %v280_v9  ;;  %s894_s20 = sshll.u32 %s236_s19, 4  ;;  %s896_s27 = sshll.u32 %s893_s18, 4  ;;  %s895_s20 = int_to_ptr.vmem [resolvable:$true] %s894_s20  ;;  %s897_s27 = int_to_ptr.hbm [resolvable:$true] %s896_s27 }
  0x2d   : > { %v282_v11 = vmax.f32 %v277_v6, %v281_v10  ;;  %s880_s26 = scalar_lea.sflag [#allocation4], %s1432_s4  ;;  %s1252_s29 = sshra.s32 %s897_s27, 4  ;;  %s1253_s29 = int_to_ptr.hbm [resolvable:$true] %s1252_s29 }
  0x2e   : > { %s1254_s30 = scalar_lea.hbm %s1253_s29, 32  ;;  %s1258_s6 = scalar_lea.hbm %s1703_s2, 64 }
  0x2f   : > { %v283_v13 = vmax.f32 %v282_v11, %v278_v8  ;;  %p1255_p4 = scmp.ne.s32.totalorder %s1253_s29, %s1254_s30  ;;  %p1259_p7 = scmp.lt.s32.totalorder %s1253_s29, %s1703_s2 }
  0x30   : > { %p1260_p8 = scmp.lt.s32.totalorder %s1258_s6, %s1254_s30 }
  0x31   : > { %v285_v14 = vmax.f32 %v283_v13, %v284_v12  ;;  %p1256_p5 = pnand %p1255_p4, %p1397_p9 }
  0x32   : > { %p1261_p10 = por %p1260_p8, %p1259_p7 }
  0x33   : > { %v286_v15 = vsub.f32 %v247_v1, %v285_v14  ;;  %v287_v16 = vsub.f32 %v248_v3, %v285_v14  ;;  %v288_v17 = vsub.f32 %v249_v2, %v285_v14  ;;  %v289_v18 = vsub.f32 %v250_v4, %v285_v14  ;;  %p1257_p6 = pneg %p1256_p5 }
  0x34   : > { %v290_v19 = vsub.f32 %v251_v5, %v285_v14 }
  0x35   : > { %v291_v20 = vmul.f32 1.442695, %v286_v15  ;;  %v293_v21 = vmul.f32 1.442695, %v287_v16  ;;  %v295_v22 = vmul.f32 1.442695, %v288_v17  ;;  %p1262_p13 = pnand %p1261_p10, %p1257_p6 }
  0x36   : > { %v297_v23 = vmul.f32 1.442695, %v289_v18  ;;  %v299_v24 = vmul.f32 1.442695, %v290_v19 }
  0x37   : > { %1108 = vpow2.f32 %v291_v20 }
  0x38   : > { %1110 = vpow2.f32 %v293_v21 }
  0x39   : > { %1112 = vpow2.f32 %v295_v22 }
  0x3a   : > { %1114 = vpow2.f32 %v297_v23 }
  0x3b   : > { %1116 = vpow2.f32 %v299_v24 }
  0x3d   : > { %v1448_v25 = vpop.eup %1108 }
  0x3e   : > { %v1450_v26 = vpop.eup %1110  ;;  %v306_v27 = vperm.slane %v1448_v25, 0  ;;  %v307_v28 = vperm.slane %v1448_v25, 1 }
  0x3f   : > { %v1454_v29 = vpop.eup %1112  ;;  %v308_v30 = vperm.slane %v1450_v26, 0  ;;  %v309_v31 = vperm.slane %v1450_v26, 1 }
  0x40   : > { %v1115_v32 = vpop.eup %1114  ;;  %v310_v33 = vperm.slane %v1454_v29, 0  ;;  %v311_v34 = vperm.slane %v1454_v29, 1  ;;  %v327_v35 = vsel %vm326_vm1, %v306_v27, 0.0  ;;  %v336_v36 = vsel %vm326_vm1, %v307_v28, 0.0 }
  0x41   : > { %v1117_v37 = vpop.eup %1116  ;;  %v312_v38 = vperm.slane %v1115_v32, 0  ;;  %v313_v39 = vperm.slane %v1115_v32, 1  ;;  %v328_v40 = vsel %vm326_vm1, %v308_v30, 0.0  ;;  %v337_v41 = vsel %vm326_vm1, %v309_v31, 0.0 }
  0x42   : > { %v314_v42 = vperm.slane %v1117_v37, 0  ;;  %v315_v43 = vperm.slane %v1117_v37, 1  ;;  %v329_v44 = vadd.f32 %v328_v40, %v327_v35  ;;  %v330_v45 = vsel %vm326_vm1, %v310_v33, 0.0 }
  0x43   : > { %v332_v46 = vsel %vm326_vm1, %v312_v38, 0.0  ;;  %v338_v47 = vadd.f32 %v337_v41, %v336_v36  ;;  %v339_v48 = vsel %vm326_vm1, %v311_v34, 0.0  ;;  %v341_v50 = vsel %vm326_vm1, %v313_v39, 0.0 }
  0x44   : > { %v331_v49 = vadd.f32 %v330_v45, %v329_v44  ;;  %v334_v51 = vsel %vm326_vm1, %v314_v42, 0.0  ;;  %v343_v54 = vsel %vm326_vm1, %v315_v43, 0.0 }
  0x45   : > { %v340_v52 = vadd.f32 %v339_v48, %v338_v47 }
  0x46   : > { %v333_v53 = vadd.f32 %v332_v46, %v331_v49 }
  0x47   : > { %v342_v55 = vadd.f32 %v341_v50, %v340_v52 }
  0x48   : > { %v335_v56 = vadd.f32 %v334_v51, %v333_v53 }
  0x49   : > { %v344_v57 = vadd.f32 %v343_v54, %v342_v55 }
  0x4a   : > { %1118 = vrcp.f32 %v335_v56  ;;  %vm350_vm2 = vweird.f32 %v335_v56  ;;  %v354_v61 = vand.u32 2147483647, %v335_v56  ;;  %v356_v0 = vand.u32 2147483648, %v335_v56 }
  0x4b   : > { %1120 = vrcp.f32 %v344_v57  ;;  %v370_v1 = vand.u32 2147483648, %v344_v57  ;;  %vm364_vm4 = vweird.f32 %v344_v57  ;;  %v368_v3 = vand.u32 2147483647, %v344_v57 }
  0x4c   : > { %v357_v7 = vor.u32 1.1754944e-38, %v356_v0  ;;  %vm355_vm8 = vcmp.eq.f32.partialorder %v354_v61, 8.507059e+37 }
  0x4d   : > { %v371_v8 = vor.u32 1.1754944e-38, %v370_v1  ;;  %vm369_vm9 = vcmp.eq.f32.partialorder %v368_v3, 8.507059e+37 }
  0x50   : > { %v1119_v58 = vpop.eup %1118 }
  0x51   : > { %v1121_v59 = vpop.eup %1120  ;;  %v346_v60 = vmul.f32 %v1119_v58, %v335_v56  ;;  %vm351_vm3 = vweird.f32 %v1119_v58 }
  0x52   : > { %v360_v62 = vmul.f32 %v1121_v59, %v344_v57  ;;  %vm365_vm5 = vweird.f32 %v1121_v59  ;;  %vm352_vm6 = vmor %vm350_vm2, %vm351_vm3 }
  0x53   : > { %v347_v63 = vsub.f32 1.0, %v346_v60  ;;  %vm366_vm7 = vmor %vm364_vm4, %vm365_vm5 }
  0x54   : > { %v361_v2 = vsub.f32 1.0, %v360_v62 }
  0x55   : > { %v348_v4 = vmul.f32 %v1119_v58, %v347_v63 }
  0x56   : > { %v362_v5 = vmul.f32 %v1121_v59, %v361_v2 }
  0x57   : > { %v349_v6 = vadd.f32 %v1119_v58, %v348_v4 }
  0x58   : > { %v363_v9 = vadd.f32 %v1121_v59, %v362_v5 }
  0x59   : > { %v353_v10 = vsel %vm352_vm6, %v1119_v58, %v349_v6 }
  0x5a   : > { %v367_v11 = vsel %vm366_vm7, %v1121_v59, %v363_v9  ;;  %v358_v12 = vsel %vm355_vm8, %v357_v7, %v353_v10 }
  0x5b   : > { %v372_v13 = vsel %vm369_vm9, %v371_v8, %v367_v11 }
  0x5c   : > { %v375_v14 = vrot.slane %v372_v13, 7 }
  0x5e   : > { %v376_v15 = vsel %vm326_vm1, %v358_v12, %v375_v14 }
  0x5f   : > { %v1472_v16 = vmul.f32 %v1448_v25, %v376_v15  ;;  %v379_v17 = vmul.f32 %v1450_v26, %v376_v15  ;;  %v380_v18 = vmul.f32 %v1454_v29, %v376_v15  ;;  %v381_v19 = vmul.f32 %v1115_v32, %v376_v15 }
  0x60   : > { %v382_v20 = vmul.f32 %v1117_v37, %v376_v15 }
  0x61   : > { %v386_v21 = vmul.f32 1.442695, %v1472_v16  ;;  %v388_v22 = vmul.f32 1.442695, %v379_v17  ;;  %v390_v23 = vmul.f32 1.442695, %v380_v18 }
  0x62   : > { %v392_v24 = vmul.f32 1.442695, %v381_v19  ;;  %v394_v27 = vmul.f32 1.442695, %v382_v20 }
  0x63   : > { %1122 = vpow2.f32 %v386_v21 }
  0x64   : > { %1124 = vpow2.f32 %v388_v22 }
  0x65   : > { %1126 = vpow2.f32 %v390_v23 }
  0x66   : > { %1128 = vpow2.f32 %v392_v24 }
  0x67   : > { %1130 = vpow2.f32 %v394_v27 }
  0x69   : > { %v1477_v28 = vpop.eup %1122 }
  0x6a   : > { %v1479_v25 = vpop.eup %1124  ;;  %v401_v26 = vperm.slane %v1477_v28, 0  ;;  %v402_v29 = vperm.slane %v1477_v28, 1 }
  0x6b   : > { %v1483_v30 = vpop.eup %1126  ;;  %v403_v31 = vperm.slane %v1479_v25, 0  ;;  %v404_v32 = vperm.slane %v1479_v25, 1 }
  0x6c   : > { %v1129_v33 = vpop.eup %1128  ;;  %v405_v34 = vperm.slane %v1483_v30, 0  ;;  %v406_v35 = vperm.slane %v1483_v30, 1  ;;  %v421_v36 = vsel %vm326_vm1, %v401_v26, 0.0  ;;  %v430_v37 = vsel %vm326_vm1, %v402_v29, 0.0 }
  0x6d   : > { %v1131_v38 = vpop.eup %1130  ;;  %v407_v39 = vperm.slane %v1129_v33, 0  ;;  %v408_v40 = vperm.slane %v1129_v33, 1  ;;  %v422_v41 = vsel %vm326_vm1, %v403_v31, 0.0  ;;  %v431_v42 = vsel %vm326_vm1, %v404_v32, 0.0 }
  0x6e   : > { %v409_v43 = vperm.slane %v1131_v38, 0  ;;  %v410_v44 = vperm.slane %v1131_v38, 1  ;;  %v423_v45 = vadd.f32 %v422_v41, %v421_v36  ;;  %v424_v46 = vsel %vm326_vm1, %v405_v34, 0.0 }
  0x6f   : > { %v426_v47 = vsel %vm326_vm1, %v407_v39, 0.0  ;;  %v432_v48 = vadd.f32 %v431_v42, %v430_v37  ;;  %v433_v49 = vsel %vm326_vm1, %v406_v35, 0.0  ;;  %v435_v51 = vsel %vm326_vm1, %v408_v40, 0.0 }
  0x70   : > { %v425_v50 = vadd.f32 %v424_v46, %v423_v45  ;;  %v428_v52 = vsel %vm326_vm1, %v409_v43, 0.0  ;;  %v437_v55 = vsel %vm326_vm1, %v410_v44, 0.0 }
  0x71   : > { %v434_v53 = vadd.f32 %v433_v49, %v432_v48 }
  0x72   : > { %v427_v54 = vadd.f32 %v426_v47, %v425_v50 }
  0x73   : > { %v436_v56 = vadd.f32 %v435_v51, %v434_v53 }
  0x74   : > { %v429_v57 = vadd.f32 %v428_v52, %v427_v54 }
  0x75   : > { %v438_v58 = vadd.f32 %v437_v55, %v436_v56 }
  0x76   : > { %1132 = vrcp.f32 %v429_v57  ;;  %vm444_vm10 = vweird.f32 %v429_v57  ;;  %v448_v62 = vand.u32 2147483647, %v429_v57  ;;  %v450_v1 = vand.u32 2147483648, %v429_v57 }
  0x77   : > { %1134 = vrcp.f32 %v438_v58  ;;  %v464_v2 = vand.u32 2147483648, %v438_v58  ;;  %vm458_vm12 = vweird.f32 %v438_v58  ;;  %v462_v4 = vand.u32 2147483647, %v438_v58 }
  0x78   : > { %v451_v8 = vor.u32 1.1754944e-38, %v450_v1  ;;  %vm449_vm0 = vcmp.eq.f32.partialorder %v448_v62, 8.507059e+37 }
  0x79   : > { %v465_v9 = vor.u32 1.1754944e-38, %v464_v2  ;;  %vm463_vm2 = vcmp.eq.f32.partialorder %v462_v4, 8.507059e+37 }
  0x7c   : > { %v1133_v59 = vpop.eup %1132 }
  0x7d   : > { %v1135_v60 = vpop.eup %1134  ;;  %v440_v61 = vmul.f32 %v1133_v59, %v429_v57  ;;  %vm445_vm11 = vweird.f32 %v1133_v59 }
  0x7e   : > { %v454_v63 = vmul.f32 %v1135_v60, %v438_v58  ;;  %vm459_vm13 = vweird.f32 %v1135_v60  ;;  %vm446_vm14 = vmor %vm444_vm10, %vm445_vm11 }
  0x7f   : > { %v441_v0 = vsub.f32 1.0, %v440_v61  ;;  %vm460_vm15 = vmor %vm458_vm12, %vm459_vm13 }
  0x80   : > { %v455_v3 = vsub.f32 1.0, %v454_v63 }
  0x81   : > { %v442_v5 = vmul.f32 %v1133_v59, %v441_v0 }
  0x82   : > { %v456_v6 = vmul.f32 %v1135_v60, %v455_v3 }
  0x83   : > { %v443_v7 = vadd.f32 %v1133_v59, %v442_v5 }
  0x84   : > { %v457_v10 = vadd.f32 %v1135_v60, %v456_v6 }
  0x85   : > { %v447_v11 = vsel %vm446_vm14, %v1133_v59, %v443_v7 }
  0x86   : > { %v461_v12 = vsel %vm460_vm15, %v1135_v60, %v457_v10  ;;  %v452_v13 = vsel %vm449_vm0, %v451_v8, %v447_v11 }
  0x87   : > { %v466_v14 = vsel %vm463_vm2, %v465_v9, %v461_v12 }
  0x88   : > { %v469_v15 = vrot.slane %v466_v14, 7 }
  0x8a   : > { %v470_v17 = vsel %vm326_vm1, %v452_v13, %v469_v15 }
  0x8b   : > { %v472_v18 = vmul.f32 %v1477_v28, %v470_v17  ;;  %v1502_v19 = vmul.f32 %v1479_v25, %v470_v17  ;;  %v474_v20 = vmul.f32 %v1483_v30, %v470_v17  ;;  %v475_v21 = vmul.f32 %v1129_v33, %v470_v17 }
  0x8c   : > { %v476_v22 = vmul.f32 %v1131_v38, %v470_v17 }
  0x8d   : > { %v480_v23 = vmul.f32 1.442695, %v472_v18  ;;  %v482_v24 = vmul.f32 1.442695, %v1502_v19  ;;  %v484_v27 = vmul.f32 1.442695, %v474_v20 }
  0x8e   : > { %v486_v26 = vmul.f32 1.442695, %v475_v21  ;;  %v488_v29 = vmul.f32 1.442695, %v476_v22 }
  0x8f   : > { %1136 = vpow2.f32 %v480_v23 }
  0x90   : > { %1138 = vpow2.f32 %v482_v24 }
  0x91   : > { %1140 = vpow2.f32 %v484_v27 }
  0x92   : > { %1142 = vpow2.f32 %v486_v26 }
  0x93   : > { %1144 = vpow2.f32 %v488_v29 }
  0x95   : > { %v1506_v31 = vpop.eup %1136 }
  0x96   : > { %v1508_v28 = vpop.eup %1138  ;;  %v495_v25 = vperm.slane %v1506_v31, 0  ;;  %v496_v30 = vperm.slane %v1506_v31, 1 }
  0x97   : > { %v1512_v32 = vpop.eup %1140  ;;  %v497_v33 = vperm.slane %v1508_v28, 0  ;;  %v498_v34 = vperm.slane %v1508_v28, 1 }
  0x98   : > { %v1143_v35 = vpop.eup %1142  ;;  %v499_v36 = vperm.slane %v1512_v32, 0  ;;  %v500_v37 = vperm.slane %v1512_v32, 1  ;;  %v515_v38 = vsel %vm326_vm1, %v495_v25, 0.0  ;;  %v524_v39 = vsel %vm326_vm1, %v496_v30, 0.0 }
  0x99   : > { %v1145_v40 = vpop.eup %1144  ;;  %v501_v41 = vperm.slane %v1143_v35, 0  ;;  %v502_v42 = vperm.slane %v1143_v35, 1  ;;  %v516_v43 = vsel %vm326_vm1, %v497_v33, 0.0  ;;  %v525_v44 = vsel %vm326_vm1, %v498_v34, 0.0 }
  0x9a   : > { %v503_v45 = vperm.slane %v1145_v40, 0  ;;  %v504_v46 = vperm.slane %v1145_v40, 1  ;;  %v517_v47 = vadd.f32 %v516_v43, %v515_v38  ;;  %v518_v48 = vsel %vm326_vm1, %v499_v36, 0.0 }
  0x9b   : > { %v520_v49 = vsel %vm326_vm1, %v501_v41, 0.0  ;;  %v526_v50 = vadd.f32 %v525_v44, %v524_v39  ;;  %v527_v51 = vsel %vm326_vm1, %v500_v37, 0.0  ;;  %v529_v53 = vsel %vm326_vm1, %v502_v42, 0.0 }
  0x9c   : > { %v519_v52 = vadd.f32 %v518_v48, %v517_v47  ;;  %v522_v54 = vsel %vm326_vm1, %v503_v45, 0.0  ;;  %v531_v57 = vsel %vm326_vm1, %v504_v46, 0.0 }
  0x9d   : > { %v528_v55 = vadd.f32 %v527_v51, %v526_v50 }
  0x9e   : > { %v521_v56 = vadd.f32 %v520_v49, %v519_v52 }
  0x9f   : > { %v530_v58 = vadd.f32 %v529_v53, %v528_v55 }
  0xa0   : > { %v523_v59 = vadd.f32 %v522_v54, %v521_v56 }
  0xa1   : > { %v532_v60 = vadd.f32 %v531_v57, %v530_v58 }
  0xa2   : > { %1146 = vrcp.f32 %v523_v59  ;;  %vm538_vm3 = vweird.f32 %v523_v59  ;;  %v542_v0 = vand.u32 2147483647, %v523_v59  ;;  %v544_v3 = vand.u32 2147483648, %v523_v59 }
  0xa3   : > { %1148 = vrcp.f32 %v532_v60  ;;  %v558_v4 = vand.u32 2147483648, %v532_v60  ;;  %vm552_vm5 = vweird.f32 %v532_v60  ;;  %v556_v6 = vand.u32 2147483647, %v532_v60 }
  0xa4   : > { %v545_v10 = vor.u32 1.1754944e-38, %v544_v3  ;;  %vm543_vm9 = vcmp.eq.f32.partialorder %v542_v0, 8.507059e+37 }
  0xa5   : > { %v559_v11 = vor.u32 1.1754944e-38, %v558_v4  ;;  %vm557_vm10 = vcmp.eq.f32.partialorder %v556_v6, 8.507059e+37 }
  0xa8   : > { %v1147_v61 = vpop.eup %1146 }
  0xa9   : > { %v1149_v62 = vpop.eup %1148  ;;  %v534_v63 = vmul.f32 %v1147_v61, %v523_v59  ;;  %vm539_vm4 = vweird.f32 %v1147_v61 }
  0xaa   : > { %v548_v1 = vmul.f32 %v1149_v62, %v532_v60  ;;  %vm553_vm6 = vweird.f32 %v1149_v62  ;;  %vm540_vm7 = vmor %vm538_vm3, %vm539_vm4 }
  0xab   : > { %v535_v2 = vsub.f32 1.0, %v534_v63  ;;  %vm554_vm8 = vmor %vm552_vm5, %vm553_vm6 }
  0xac   : > { %v549_v5 = vsub.f32 1.0, %v548_v1 }
  0xad   : > { %v536_v7 = vmul.f32 %v1147_v61, %v535_v2 }
  0xae   : > { %v550_v8 = vmul.f32 %v1149_v62, %v549_v5 }
  0xaf   : > { %v537_v9 = vadd.f32 %v1147_v61, %v536_v7 }
  0xb0   : > { %v551_v12 = vadd.f32 %v1149_v62, %v550_v8 }
  0xb1   : > { %v541_v13 = vsel %vm540_vm7, %v1147_v61, %v537_v9 }
  0xb2   : > { %v555_v14 = vsel %vm554_vm8, %v1149_v62, %v551_v12  ;;  %v546_v15 = vsel %vm543_vm9, %v545_v10, %v541_v13 }
  0xb3   : > { %v560_v17 = vsel %vm557_vm10, %v559_v11, %v555_v14 }
  0xb4   : > { %v563_v18 = vrot.slane %v560_v17, 7 }
  0xb6   : > { %v564_v20 = vsel %vm326_vm1, %v546_v15, %v563_v18 }
  0xb7   : > { %v566_v21 = vmul.f32 %v1506_v31, %v564_v20  ;;  %v567_v22 = vmul.f32 %v1508_v28, %v564_v20  ;;  %v1532_v23 = vmul.f32 %v1512_v32, %v564_v20  ;;  %v569_v24 = vmul.f32 %v1143_v35, %v564_v20 }
  0xb8   : > { %v570_v27 = vmul.f32 %v1145_v40, %v564_v20 }
  0xb9   : > { %v574_v26 = vmul.f32 1.442695, %v566_v21  ;;  %v576_v29 = vmul.f32 1.442695, %v567_v22  ;;  %v578_v25 = vmul.f32 1.442695, %v1532_v23 }
  0xba   : > { %v580_v30 = vmul.f32 1.442695, %v569_v24  ;;  %v582_v33 = vmul.f32 1.442695, %v570_v27 }
  0xbb   : > { %1150 = vpow2.f32 %v574_v26 }
  0xbc   : > { %1152 = vpow2.f32 %v576_v29 }
  0xbd   : > { %1154 = vpow2.f32 %v578_v25 }
  0xbe   : > { %1156 = vpow2.f32 %v580_v30 }
  0xbf   : > { %1158 = vpow2.f32 %v582_v33 }
  0xc1   : > { %v1535_v34 = vpop.eup %1150 }
  0xc2   : > { %v1537_v31 = vpop.eup %1152  ;;  %v589_v28 = vperm.slane %v1535_v34, 0  ;;  %v590_v32 = vperm.slane %v1535_v34, 1 }
  0xc3   : > { %v1541_v35 = vpop.eup %1154  ;;  %v591_v36 = vperm.slane %v1537_v31, 0  ;;  %v592_v37 = vperm.slane %v1537_v31, 1 }
  0xc4   : > { %v1157_v38 = vpop.eup %1156  ;;  %v593_v39 = vperm.slane %v1541_v35, 0  ;;  %v594_v40 = vperm.slane %v1541_v35, 1  ;;  %v609_v41 = vsel %vm326_vm1, %v589_v28, 0.0  ;;  %v618_v42 = vsel %vm326_vm1, %v590_v32, 0.0 }
  0xc5   : > { %v1159_v43 = vpop.eup %1158  ;;  %v595_v44 = vperm.slane %v1157_v38, 0  ;;  %v596_v45 = vperm.slane %v1157_v38, 1  ;;  %v610_v46 = vsel %vm326_vm1, %v591_v36, 0.0  ;;  %v619_v47 = vsel %vm326_vm1, %v592_v37, 0.0 }
  0xc6   : > { %v597_v48 = vperm.slane %v1159_v43, 0  ;;  %v598_v49 = vperm.slane %v1159_v43, 1  ;;  %v611_v50 = vadd.f32 %v610_v46, %v609_v41  ;;  %v612_v51 = vsel %vm326_vm1, %v593_v39, 0.0 }
  0xc7   : > { %v614_v52 = vsel %vm326_vm1, %v595_v44, 0.0  ;;  %v620_v53 = vadd.f32 %v619_v47, %v618_v42  ;;  %v621_v54 = vsel %vm326_vm1, %v594_v40, 0.0  ;;  %v623_v56 = vsel %vm326_vm1, %v596_v45, 0.0 }
  0xc8   : > { %v613_v55 = vadd.f32 %v612_v51, %v611_v50  ;;  %v616_v57 = vsel %vm326_vm1, %v597_v48, 0.0  ;;  %v625_v60 = vsel %vm326_vm1, %v598_v49, 0.0 }
  0xc9   : > { %v622_v58 = vadd.f32 %v621_v54, %v620_v53 }
  0xca   : > { %v615_v59 = vadd.f32 %v614_v52, %v613_v55 }
  0xcb   : > { %v624_v61 = vadd.f32 %v623_v56, %v622_v58 }
  0xcc   : > { %v617_v62 = vadd.f32 %v616_v57, %v615_v59  ;;  %v252_v59 = vld [vmem:[%s1442_s8] sm:$0x3] }
  0xcd   : > { %v626_v63 = vadd.f32 %v625_v60, %v624_v61  ;;  %vm253_vm4 = vcmp.eq.s32.totalorder %v252_v59, 0  ;;  %vm256_vm5 = vcmp.eq.s32.totalorder %v252_v59, 1  ;;  %vm259_vm6 = vcmp.eq.s32.totalorder %v252_v59, 2 }
  0xce   : > { %1160 = vrcp.f32 %v617_v62  ;;  %vm632_vm11 = vweird.f32 %v617_v62  ;;  %v636_v3 = vand.u32 2147483647, %v617_v62  ;;  %v638_v6 = vand.u32 2147483648, %v617_v62 }
  0xcf   : > { %1162 = vrcp.f32 %v626_v63  ;;  %v652_v7 = vand.u32 2147483648, %v626_v63  ;;  %vm646_vm13 = vweird.f32 %v626_v63  ;;  %v650_v9 = vand.u32 2147483647, %v626_v63 }
  0xd0   : > { %v639_v13 = vor.u32 1.1754944e-38, %v638_v6  ;;  %vm637_vm2 = vcmp.eq.f32.partialorder %v636_v3, 8.507059e+37  ;;  %vm262_vm7 = vcmp.eq.s32.totalorder %v252_v59, 3 }
  0xd1   : > { %v653_v14 = vor.u32 1.1754944e-38, %v652_v7  ;;  %vm651_vm3 = vcmp.eq.f32.partialorder %v650_v9, 8.507059e+37 }
  0xd4   : > { %v1161_v0 = vpop.eup %1160 }
  0xd5   : > { %v1163_v1 = vpop.eup %1162  ;;  %v628_v2 = vmul.f32 %v1161_v0, %v617_v62  ;;  %vm633_vm12 = vweird.f32 %v1161_v0 }
  0xd6   : > { %v642_v4 = vmul.f32 %v1163_v1, %v626_v63  ;;  %vm647_vm14 = vweird.f32 %v1163_v1  ;;  %vm634_vm15 = vmor %vm632_vm11, %vm633_vm12  ;;  %vm265_vm12 = vcmp.eq.s32.totalorder %v252_v59, 4 }
  0xd7   : > { %v629_v5 = vsub.f32 1.0, %v628_v2  ;;  %vm648_vm0 = vmor %vm646_vm13, %vm647_vm14 }
  0xd8   : > { %v643_v8 = vsub.f32 1.0, %v642_v4 }
  0xd9   : > { %v630_v10 = vmul.f32 %v1161_v0, %v629_v5  ;;  %v1328_v5 = vmov 0.0  }
  0xda   : > { %v644_v11 = vmul.f32 %v1163_v1, %v643_v8  ;;  %v1579_v6 = vsel %vm253_vm4, 1.0, %v1328_v5  ;;  %v1581_v7 = vsel %vm256_vm5, 1.0, %v1328_v5  ;;  %v1585_v9 = vsel %vm259_vm6, 1.0, %v1328_v5 }
  0xdb   : > { %v631_v12 = vadd.f32 %v1161_v0, %v630_v10  ;;  %v383_v8 = vmul.f32 %v1579_v6, %v1472_v16  ;;  %v477_v10 = vmul.f32 %v1581_v7, %v1502_v19  ;;  %vm841_vm4 = vcmask 1043456  }
  0xdc   : > { %v645_v15 = vadd.f32 %v1163_v1, %v644_v11  ;;  %vm844_vm5 = vcmask 1044480   ;;  %vm847_vm6 = vcmask 1045504  }
  0xdd   : > { %v635_v17 = vsel %vm634_vm15, %v1161_v0, %v631_v12  ;;  %vm835_vm15 = vcmask 1041408  }
  0xde   : > { %v649_v18 = vsel %vm648_vm0, %v1163_v1, %v645_v15  ;;  %v640_v20 = vsel %vm637_vm2, %v639_v13, %v635_v17  ;;  %v1589_v13 = vsel %vm262_vm7, 1.0, %v1328_v5  ;;  %v759_v17 = vperm.slane %v383_v8, 0 }
  0xdf   : > { %v654_v21 = vsel %vm651_vm3, %v653_v14, %v649_v18  ;;  %v571_v14 = vmul.f32 %v1585_v9, %v1532_v23  ;;  %vm838_vm3 = vcmask 1042432   ;;  %vm850_vm7 = vcmask 1046528  }
  0xe0   : > { %v657_v22 = vrot.slane %v654_v21, 7  ;;  %v764_v21 = vperm.slane %v477_v10, 0 }
  0xe2   : > { %v658_v24 = vsel %vm326_vm1, %v640_v20, %v657_v22 }
  0xe3   : > { %v660_v27 = vmul.f32 %v1535_v34, %v658_v24  ;;  %v661_v26 = vmul.f32 %v1537_v31, %v658_v24  ;;  %v662_v29 = vmul.f32 %v1541_v35, %v658_v24  ;;  %v1561_v25 = vmul.f32 %v1157_v38, %v658_v24 }
  0xe4   : > { %v664_v30 = vmul.f32 %v1159_v43, %v658_v24 }
  0xe5   : > { %v668_v33 = vmul.f32 1.442695, %v660_v27  ;;  %v670_v28 = vmul.f32 1.442695, %v661_v26  ;;  %v672_v32 = vmul.f32 1.442695, %v662_v29 }
  0xe6   : > { %v674_v36 = vmul.f32 1.442695, %v1561_v25  ;;  %v676_v37 = vmul.f32 1.442695, %v664_v30  ;;  %v665_v30 = vmul.f32 %v1589_v13, %v1561_v25 }
  0xe7   : > { %1164 = vpow2.f32 %v668_v33 }
  0xe8   : > { %1166 = vpow2.f32 %v670_v28  ;;  %v769_v28 = vperm.slane %v571_v14, 0 }
  0xe9   : > { %1168 = vpow2.f32 %v672_v32 }
  0xea   : > { %1170 = vpow2.f32 %v674_v36 }
  0xeb   : > { %1172 = vpow2.f32 %v676_v37  ;;  %v833_v37 = vsel %vm326_vm1, %v759_v17, %v764_v21 }
  0xed   : > { %v1165_v39 = vpop.eup %1164 }
  0xee   : > { %v1167_v34 = vpop.eup %1166  ;;  %v683_v40 = vperm.slane %v1165_v39, 0  ;;  %v684_v31 = vperm.slane %v1165_v39, 1  ;;  %v760_v39 = vperm.slane %v383_v8, 1 }
  0xef   : > { %v1169_v41 = vpop.eup %1168  ;;  %v685_v35 = vperm.slane %v1167_v34, 0  ;;  %v686_v38 = vperm.slane %v1167_v34, 1  ;;  %v765_v34 = vperm.slane %v477_v10, 1  ;;  %v824_v10 = vperm.slane %v1589_v13, 0 }
  0xf0   : > { %v1171_v42 = vpop.eup %1170  ;;  %v687_v43 = vperm.slane %v1169_v41, 0  ;;  %v688_v44 = vperm.slane %v1169_v41, 1  ;;  %v703_v45 = vsel %vm326_vm1, %v683_v40, 0.0  ;;  %v712_v46 = vsel %vm326_vm1, %v684_v31, 0.0 }
  0xf1   : > { %v1566_v47 = vpop.eup %1172  ;;  %v689_v48 = vperm.slane %v1171_v42, 0  ;;  %v690_v49 = vperm.slane %v1171_v42, 1  ;;  %v704_v50 = vsel %vm326_vm1, %v685_v35, 0.0  ;;  %v713_v51 = vsel %vm326_vm1, %v686_v38, 0.0 }
  0xf2   : > { %v691_v52 = vperm.slane %v1566_v47, 0  ;;  %v692_v53 = vperm.slane %v1566_v47, 1  ;;  %v705_v54 = vadd.f32 %v704_v50, %v703_v45  ;;  %v706_v55 = vsel %vm326_vm1, %v687_v43, 0.0 }
  0xf3   : > { %v708_v56 = vsel %vm326_vm1, %v689_v48, 0.0  ;;  %v714_v57 = vadd.f32 %v713_v51, %v712_v46  ;;  %v715_v58 = vsel %vm326_vm1, %v688_v44, 0.0  ;;  %v717_v61 = vsel %vm326_vm1, %v690_v49, 0.0 }
  0xf4   : > { %v707_v60 = vadd.f32 %v706_v55, %v705_v54  ;;  %v710_v62 = vsel %vm326_vm1, %v691_v52, 0.0  ;;  %v719_v1 = vsel %vm326_vm1, %v692_v53, 0.0  ;;  %v1606_v42 = vsel %vm265_vm12, 1.0, %v1328_v5 }
  0xf5   : > { %v716_v63 = vadd.f32 %v715_v58, %v714_v57  ;;  %v774_v44 = vperm.slane %v665_v30, 0  ;;  %v770_v45 = vperm.slane %v571_v14, 1  ;;  %v836_v48 = vsel %vm835_vm15, %v833_v37, %v769_v28 }
  0xf6   : > { %v709_v0 = vadd.f32 %v708_v56, %v707_v60  ;;  %v834_v49 = vsel %vm326_vm1, %v760_v39, %v765_v34  ;;  %v784_v52 = vperm.slane %v1472_v16, 0  ;;  %v789_v53 = vperm.slane %v1502_v19, 0 }
  0xf7   : > { %v718_v2 = vadd.f32 %v717_v61, %v716_v63  ;;  %v794_v55 = vperm.slane %v1532_v23, 0  ;;  %v775_v56 = vperm.slane %v665_v30, 1  ;;  %v839_v57 = vsel %vm838_vm3, %v836_v48, %v774_v44 }
  0xf8   : > { %v711_v3 = vadd.f32 %v710_v62, %v709_v0  ;;  %v837_v58 = vsel %vm835_vm15, %v834_v49, %v770_v45  ;;  %v785_v60 = vperm.slane %v1472_v16, 1  ;;  %v790_v61 = vperm.slane %v1502_v19, 1 }
  0xf9   : > { %v720_v4 = vadd.f32 %v719_v1, %v718_v2  ;;  %v795_v63 = vperm.slane %v1532_v23, 1  ;;  %v799_v0 = vperm.slane %v1561_v25, 0  ;;  %v800_v1 = vperm.slane %v1561_v25, 1 }
  0xfa   : > { %1174 = vrcp.f32 %v711_v3  ;;  %vm726_vm8 = vweird.f32 %v711_v3  ;;  %v730_v18 = vand.u32 2147483647, %v711_v3  ;;  %v732_v24 = vand.u32 2147483648, %v711_v3 }
  0xfb   : > { %1176 = vrcp.f32 %v720_v4  ;;  %v746_v27 = vand.u32 2147483648, %v720_v4  ;;  %vm740_vm10 = vweird.f32 %v720_v4  ;;  %v744_v29 = vand.u32 2147483647, %v720_v4 }
  0xfc   : > { %v733_v31 = vor.u32 1.1754944e-38, %v732_v24  ;;  %vm731_vm0 = vcmp.eq.f32.partialorder %v730_v18, 8.507059e+37  ;;  %v840_v2 = vsel %vm838_vm3, %v837_v58, %v775_v56  ;;  %v810_v5 = vperm.slane %v1579_v6, 1 }
  0xfd   : > { %v747_v35 = vor.u32 1.1754944e-38, %v746_v27  ;;  %vm745_vm2 = vcmp.eq.f32.partialorder %v744_v29, 8.507059e+37  ;;  %v819_v23 = vperm.slane %v1585_v9, 0  ;;  %v820_v25 = vperm.slane %v1585_v9, 1 }
  0xfe   : > { %v829_v17 = vperm.slane %v1606_v42, 0  ;;  %v830_v18 = vperm.slane %v1606_v42, 1 }
 0x100   : > { %v1175_v11 = vpop.eup %1174 }
 0x101   : > { %v1177_v12 = vpop.eup %1176  ;;  %v722_v15 = vmul.f32 %v1175_v11, %v711_v3  ;;  %vm727_vm9 = vweird.f32 %v1175_v11  ;;  %v809_v3 = vperm.slane %v1579_v6, 0 }
 0x102   : > { %v736_v20 = vmul.f32 %v1177_v12, %v720_v4  ;;  %vm741_vm11 = vweird.f32 %v1177_v12  ;;  %vm1596_vm13 = vmor %vm726_vm8, %vm727_vm9  ;;  %v814_v4 = vperm.slane %v1581_v7, 0 }
 0x103   : > { %v723_v22 = vsub.f32 1.0, %v722_v15  ;;  %vm1601_vm14 = vmor %vm740_vm10, %vm741_vm11 }
 0x104   : > { %v737_v26 = vsub.f32 1.0, %v736_v20 }
 0x105   : > { %v724_v33 = vmul.f32 %v1175_v11, %v723_v22 }
 0x106   : > { %v738_v36 = vmul.f32 %v1177_v12, %v737_v26 }
 0x107   : > { %v725_v40 = vadd.f32 %v1175_v11, %v724_v33 }
 0x108   : > { %v739_v38 = vadd.f32 %v1177_v12, %v738_v36 }
 0x109   : > { %v729_v43 = vsel %vm1596_vm13, %v1175_v11, %v725_v40  ;;  %v825_v11 = vperm.slane %v1589_v13, 1 }
 0x10a   : > { %v743_v46 = vsel %vm1601_vm14, %v1177_v12, %v739_v38  ;;  %v734_v50 = vsel %vm731_vm0, %v733_v31, %v729_v43 }
 0x10b   : > { %v748_v51 = vsel %vm745_vm2, %v747_v35, %v743_v46 }
 0x10c   : > { %v751_v54 = vrot.slane %v748_v51, 7 }
 0x10e   : > { %v752_v59 = vsel %vm326_vm1, %v734_v50, %v751_v54 }
 0x10f   : > { %v754_v62 = vmul.f32 %v1566_v47, %v752_v59  ;;  %v815_v47 = vperm.slane %v1581_v7, 1 }
 0x111   : > { %v755_v16 = vmul.f32 %v1606_v42, %v754_v62  ;;  %v804_v19 = vperm.slane %v754_v62, 0  ;;  %v805_v8 = vperm.slane %v754_v62, 1 }
 0x113   : > { %v779_v12 = vperm.slane %v755_v16, 0  ;;  %v780_v14 = vperm.slane %v755_v16, 1  ;;  %v853_v6 = vsel %vm326_vm1, %v799_v0, %v804_v19  ;;  %v854_v15 = vsel %vm326_vm1, %v800_v1, %v805_v8 }
 0x114   : > { %v855_v7 = vsel %vm835_vm15, %v853_v6, %v809_v3  ;;  %v856_v20 = vsel %vm835_vm15, %v854_v15, %v810_v5 }
 0x115   : > { %v842_v21 = vsel %vm841_vm4, %v839_v57, %v779_v12  ;;  %v843_v9 = vsel %vm841_vm4, %v840_v2, %v780_v14  ;;  %v857_v13 = vsel %vm838_vm3, %v855_v7, %v814_v4  ;;  %v858_v22 = vsel %vm838_vm3, %v856_v20, %v815_v47 }
 0x116   : > { %v845_v24 = vsel %vm844_vm5, %v842_v21, %v784_v52  ;;  %v846_v27 = vsel %vm844_vm5, %v843_v9, %v785_v60  ;;  %v859_v26 = vsel %vm841_vm4, %v857_v13, %v819_v23  ;;  %v860_v29 = vsel %vm841_vm4, %v858_v22, %v820_v25 }
 0x117   : > { %v848_v30 = vsel %vm847_vm6, %v845_v24, %v789_v53  ;;  %v849_v33 = vsel %vm847_vm6, %v846_v27, %v790_v61  ;;  %v861_v28 = vsel %vm844_vm5, %v859_v26, %v824_v10  ;;  %v862_v32 = vsel %vm844_vm5, %v860_v29, %v825_v11 }
 0x118   : > { %v851_v36 = vsel %vm850_vm7, %v848_v30, %v794_v55  ;;  %v852_v37 = vsel %vm850_vm7, %v849_v33, %v795_v63  ;;  %v863_v39 = vsel %vm847_vm6, %v861_v28, %v829_v17  ;;  %v864_v34 = vsel %vm847_vm6, %v862_v32, %v830_v18 }
 0x119   : > { %v865_v40 = vsel %vm850_vm7, %v863_v39, 0.0  ;;  %v866_v31 = vsel %vm850_vm7, %v864_v34, 0.0  ;;  %875 = vst [vmem:[%s236_s19] sm:$0xff] %v851_v36 }
 0x11a   : > { %876 = vst [vmem:[%s236_s19 + $0x8] sm:$0xff] %v852_v37 }
 0x11b   : > { %877 = vst [vmem:[%s236_s19 + $0x10] sm:$0xff] %v865_v40 }
 0x11c   : > { %878 = vst [vmem:[%s236_s19 + $0x18] sm:$0xff] %v866_v31 }
 0x11d   : > { %1265 = shalt.err (!%p1262_p13)
}
 0x11e   : > { %s1329_s4 = smov 256   ;;  %s1330_s28 = smov 16  }
 0x11f   : > { %1040 = dma.vmem_to_hbm [thread:$0]  (%p1397_p9), %s895_s20, 512, %s897_s27, %s880_s26, %s1329_s4, %s1329_s4, %s1330_s28  }
 0x120 PF: > { %s911_s8 = sand.u32 1, %s1304_s9   ;;  %p1050_p0 = pnand %p1016_p12, %p1404_p11 }
 0x121   : > { %s912_s21 = scalar_lea.sflag [#allocation4], %s911_s8 }
 0x122   : > { %p1051_p1 = pneg %p1050_p0 }
 0x124   : > { %1299 = dma.done.wait (%p1051_p1), %s912_s21, 512  }
 0x125   : > { %1301 = vsyncadd (%p1051_p1), %s912_s21, 4294966784  ;;  %s21_s14 = sadd.s32 1, %s1324_s14   ;;  %s1713_s9 = smov %s1308_s10 }
 0x126   : > { %p18_p2 = scmp.ge.s32.totalorder %s21_s14, 4   ;;  %s1714_s10 = smov %s1312_s11 }
 0x127   : > { %s1715_s11 = smov %s1402_s23  ;;  %s1716_s12 = smov %s1320_s13 }
 0x128   : > { %s1717_s13 = smov %s1719_s17  ;;  %20 = sbr.rel (!%p18_p2) target bundleno = 8 (0x8), region = 90 }
 0x12d   :  { %918 = vsyncpa [#allocation3], 1 }
 0x12e   :  { %920 = vsyncpa [#allocation3 + $0x1], 1 }
 0x12f   :  { %921 = vsyncpa [#allocation6], 1 }
 0x130   :  { %923 = vsyncpa [#allocation6 + $0x1], 1 }
 0x131   :  { %924 = vsyncpa [#allocation4], 1 }
 0x132   :  { %926 = vsyncpa [#allocation4 + $0x1], 1 }

</bundles_post_ra>
